<compile_context>
chip_gen: v6e
topology: v6e:2x2x1
jax: 0.10.0
libtpu: 0.0.40
codegen_flags: <defaults>
</compile_context>

<pallas_src>
import jax
import jax.numpy as jnp
from jax import lax
from jax.experimental import pallas as pl
from jax.experimental.pallas import tpu as pltpu

_LANE = 128


def _mlp_kernel(x_ref, w1_ref, b1_ref, w2_ref, b2_ref, o_ref):
    # x_ref : (C_in, TILE_S)        w1_ref: (C_mid, C_in)   b1_ref: (C_mid, 1)  f32
    # w2_ref: (C_out, C_mid)        b2_ref: (C_out, 1) f32  o_ref : (C_out, TILE_S)
    x = x_ref[...]                                           # native dtype
    # First pointwise conv: contract over channels (sublanes), spatial on lanes.
    # Operands in native dtype (pure bf16 when x is bf16), f32 accumulation.
    h = jnp.dot(w1_ref[...], x, preferred_element_type=jnp.float32)
    h = h + b1_ref[...]                                      # f32 elementwise
    # Exact (erf-based) GELU, matching torch.nn.functional.gelu default.
    # TODO(synk): if bit-exactness vs torch isn't required, the tanh-approx GELU
    # moves the transcendental onto the EUP slot (cheaper than the VALU erf poly).
    h = 0.5 * h * (1.0 + lax.erf(h * 0.7071067811865476))
    # Second pointwise conv; cast back to the weight dtype so a bf16 input keeps
    # the MXU in pure-bf16 (and halves the live intermediate).
    y = jnp.dot(w2_ref[...], h.astype(w2_ref.dtype),
                preferred_element_type=jnp.float32)
    y = y + b2_ref[...]
    o_ref[...] = y.astype(o_ref.dtype)


def _tpu_hw():
    """Best-effort (VMEM capacity bytes, minimum total grid steps)."""
    vmem = None
    kind = ""
    try:
        vmem = int(pltpu.get_tpu_info().vmem_capacity_bytes)
    except Exception:
        pass
    try:
        kind = jax.devices()[0].device_kind.lower()
    except Exception:
        pass
    if vmem is None:
        # Conservative fallback (v7x-sized VMEM) if the query isn't available.
        vmem = (64 << 20) if ("v7" in kind or not kind) else (128 << 20)
    # v7x has 2 TensorCores per chip -> want >= 2 grid steps to keep both busy.
    multi_core = ("v7" in kind) or (vmem <= (64 << 20))
    return vmem, (2 if multi_core else 1)


def _choose_tile_s(s, n, c_in, c_mid, c_out, x_bytes, vmem_bytes, min_steps):
    """Largest lane-dense spatial tile that fits a ~60% VMEM budget."""
    # Bytes of VMEM per lane of tile_s:
    #   2x double-buffered x tile + 2x double-buffered out tile (input dtype)
    #   + f32 intermediate h + its cast copy back to the input dtype.
    per_lane = 2 * (c_in + c_out) * x_bytes + c_mid * (4 + x_bytes)
    resident = (2 * (c_mid * c_in + c_out * c_mid) * x_bytes
                + 2 * (c_mid + c_out) * 4)
    budget = int(vmem_bytes * 0.6) - resident
    cap = max(_LANE, min(budget // max(per_lane, 1), 32768))
    cap = (cap // _LANE) * _LANE
    # Ensure >= min_steps total grid steps (n * spatial_tiles) for megacore.
    needed_tiles = -(-min_steps // max(n, 1))
    if needed_tiles > 1 and s > _LANE:
        split = ((-(-s // needed_tiles)) + _LANE - 1) // _LANE * _LANE
        cap = min(cap, split)
    padded_s = ((s + _LANE - 1) // _LANE) * _LANE
    tile_s = min(cap, padded_s)
    if tile_s >= s:
        return s  # full-extent block (allowed even if s isn't a 128-multiple)
    # Prefer a tile that divides S evenly -> no masked boundary block.
    for t in range(tile_s, _LANE - 1, -_LANE):
        if s % t == 0:
            return t
    return tile_s


@jax.jit
def mlp_forward(x, w1, b1, w2, b2):
    """x: (N, C_in, D, H, W); w1: (C_mid, C_in); b1: (C_mid,);
    w2: (C_out, C_mid); b2: (C_out,).  Returns (N, C_out, D, H, W).

    Weights are stored PyTorch-style (out_channels, in_channels), i.e. the
    Conv3d weight with the trailing 1x1x1 dims squeezed.
    """
    n, c_in, d, hh, ww = x.shape
    c_mid = w1.shape[0]
    c_out = w2.shape[0]
    s = d * hh * ww
    x_bytes = jnp.dtype(x.dtype).itemsize

    vmem_bytes, min_steps = _tpu_hw()
    tile_s = _choose_tile_s(s, n, c_in, c_mid, c_out, x_bytes, vmem_bytes,
                            min_steps)
    grid = (n, pl.cdiv(s, tile_s))

    # Explicit scoped-VMEM limit sized to the working set (defaults are only
    # 16/32 MiB and would otherwise cap the tile size).
    need = (2 * (c_in + c_out) * tile_s * x_bytes
            + c_mid * tile_s * (4 + x_bytes)
            + 2 * (c_mid * c_in + c_out * c_mid) * x_bytes
            + 2 * (c_mid + c_out) * 4
            + (2 << 20))
    vmem_limit = int(min(max(need * 5 // 4, 32 << 20), int(vmem_bytes * 0.9)))

    # Zero-copy views: no HBM transpose, no pad copy.
    x3 = x.reshape(n, c_in, s)
    # Dot operands in the input dtype (pure-bf16 MXU when x is bf16);
    # biases stay f32 since the elementwise path accumulates in f32.
    w1c = w1.astype(x.dtype)
    w2c = w2.astype(x.dtype)
    b1_2d = b1.astype(jnp.float32).reshape(c_mid, 1)
    b2_2d = b2.astype(jnp.float32).reshape(c_out, 1)

    # Weights/biases are grid-invariant (index_map always (0, 0)); Mosaic keeps
    # the revisited blocks resident, so they are fetched once, not per step.
    out3 = pl.pallas_call(
        _mlp_kernel,
        out_shape=jax.ShapeDtypeStruct((n, c_out, s), x.dtype),
        grid_spec=pltpu.PrefetchScalarGridSpec(
            num_scalar_prefetch=0,
            grid=grid,
            in_specs=[
                pl.BlockSpec((pl.Squeezed(), c_in, tile_s),
                             lambda i, j: (i, 0, j)),
                pl.BlockSpec((c_mid, c_in), lambda i, j: (0, 0)),
                pl.BlockSpec((c_mid, 1), lambda i, j: (0, 0)),
                pl.BlockSpec((c_out, c_mid), lambda i, j: (0, 0)),
                pl.BlockSpec((c_out, 1), lambda i, j: (0, 0)),
            ],
            out_specs=pl.BlockSpec((pl.Squeezed(), c_out, tile_s),
                                   lambda i, j: (i, 0, j)),
        ),
        compiler_params=pltpu.CompilerParams(
            # Both axes independent -> shard across TensorCores (v7x megacore).
            dimension_semantics=("parallel", "parallel"),
            vmem_limit_bytes=vmem_limit),
    )(x3, w1c, b1_2d, w2c, b2_2d)

    return out3.reshape(n, c_out, d, hh, ww)


def _init_params(key, in_channels, mid_channels, out_channels):
    """Deterministic init mimicking PyTorch Conv3d (kaiming-uniform-ish).

    Conv3d weight shape is (C_out, C_in, 1, 1, 1); we store the squeezed
    (C_out, C_in) matrix directly.
    """
    k1, k2, k3, k4 = jax.random.split(key, 4)
    bound1 = 1.0 / jnp.sqrt(in_channels)
    bound2 = 1.0 / jnp.sqrt(mid_channels)
    w1 = jax.random.uniform(k1, (mid_channels, in_channels),
                            minval=-bound1, maxval=bound1, dtype=jnp.float32)
    b1 = jax.random.uniform(k2, (mid_channels,),
                            minval=-bound1, maxval=bound1, dtype=jnp.float32)
    w2 = jax.random.uniform(k3, (out_channels, mid_channels),
                            minval=-bound2, maxval=bound2, dtype=jnp.float32)
    b2 = jax.random.uniform(k4, (out_channels,),
                            minval=-bound2, maxval=bound2, dtype=jnp.float32)
    return w1, b1, w2, b2


def _reference(x, w1, b1, w2, b2):
    # Pure-JAX reference of the two 1x1x1 convs + exact GELU, in NCDHW.
    h = jnp.einsum("ncdhw,mc->nmdhw", x, w1) + b1[None, :, None, None, None]
    h = 0.5 * h * (1.0 + lax.erf(h * 0.7071067811865476))
    y = jnp.einsum("nmdhw,om->nodhw", h, w2) + b2[None, :, None, None, None]
    return y


if __name__ == "__main__":
    key = jax.random.PRNGKey(0)
    kx, kp = jax.random.split(key)

    N, C_IN, C_MID, C_OUT = 2, 4, 32, 4
    D = H = W = 8  # S = D*H*W = 512 spatial positions per batch element

    x = jax.random.normal(kx, (N, C_IN, D, H, W), dtype=jnp.float32)
    w1, b1, w2, b2 = _init_params(kp, C_IN, C_MID, C_OUT)

    out = mlp_forward(x, w1, b1, w2, b2)
    out = jax.block_until_ready(out)

    ref = _reference(x, w1, b1, w2, b2)
    assert out.shape == (N, C_OUT, D, H, W), out.shape
    assert jnp.allclose(out, ref, atol=1e-5, rtol=1e-5), float(
        jnp.max(jnp.abs(out - ref)))

    print("KERNEL_OK")
</pallas_src>

<mosaic_0001>
module attributes {stable_mosaic.version = 11 : i64} {
  func.func @_mlp_kernel(%arg0: i32, %arg1: i32, %arg2: memref<1x4x512xf32, #tpu.memory_space<vmem>>, %arg3: memref<32x4xf32, #tpu.memory_space<vmem>>, %arg4: memref<32x1xf32, #tpu.memory_space<vmem>>, %arg5: memref<4x32xf32, #tpu.memory_space<vmem>>, %arg6: memref<4x1xf32, #tpu.memory_space<vmem>>, %arg7: memref<1x4x512xf32, #tpu.memory_space<vmem>>) attributes {dimension_semantics = [#tpu.dimension_semantics<parallel>, #tpu.dimension_semantics<parallel>], iteration_bounds = array<i64: 2, 1>, scalar_prefetch = 0 : i64, scratch_operands = 0 : i64, tpu.core_type = #tpu.core_type<tc>, window_params = [{transform_indices = @transform_0, window_bounds = array<i64: 1, 4, 512>}, {pipeline_mode = #tpu.pipeline_mode<synchronous>, transform_indices = @transform_1, window_bounds = array<i64: 32, 4>}, {pipeline_mode = #tpu.pipeline_mode<synchronous>, transform_indices = @transform_2, window_bounds = array<i64: 32, 1>}, {pipeline_mode = #tpu.pipeline_mode<synchronous>, transform_indices = @transform_3, window_bounds = array<i64: 4, 32>}, {pipeline_mode = #tpu.pipeline_mode<synchronous>, transform_indices = @transform_4, window_bounds = array<i64: 4, 1>}, {transform_indices = @transform_5, window_bounds = array<i64: 1, 4, 512>}]} {
    %c0 = arith.constant 0 : index
    %c0_0 = arith.constant 0 : index
    %c0_1 = arith.constant 0 : index
    %0 = vector.load %arg2[%c0, %c0_0, %c0_1] : memref<1x4x512xf32, #tpu.memory_space<vmem>>, vector<1x4x512xf32>
    %1 = vector.shape_cast %0 : vector<1x4x512xf32> to vector<4x512xf32>
    %c0_2 = arith.constant 0 : index
    %c0_3 = arith.constant 0 : index
    %2 = vector.load %arg3[%c0_2, %c0_3] : memref<32x4xf32, #tpu.memory_space<vmem>>, vector<32x4xf32>
    %cst = arith.constant dense<0.000000e+00> : vector<32x512xf32>
    %3 = tpu.matmul %2, %1, %cst {dimension_numbers = #tpu.dot_dimension_numbers<[1], [0], [0], [1], [0, 0, 1, 1], [], []>} : vector<32x4xf32>, vector<4x512xf32>, vector<32x512xf32> -> vector<32x512xf32>
    %c0_4 = arith.constant 0 : index
    %c0_5 = arith.constant 0 : index
    %4 = vector.load %arg4[%c0_4, %c0_5] : memref<32x1xf32, #tpu.memory_space<vmem>>, vector<32x1xf32>
    %5 = vector.broadcast %4 : vector<32x1xf32> to vector<32x512xf32>
    %6 = arith.addf %3, %5 : vector<32x512xf32>
    %cst_6 = arith.constant 5.000000e-01 : f32
    %7 = vector.broadcast %cst_6 : f32 to vector<32x512xf32>
    %8 = arith.mulf %7, %6 : vector<32x512xf32>
    %cst_7 = arith.constant 0.707106769 : f32
    %9 = vector.broadcast %cst_7 : f32 to vector<32x512xf32>
    %10 = arith.mulf %6, %9 : vector<32x512xf32>
    %11 = math.erf %10 : vector<32x512xf32>
    %cst_8 = arith.constant 1.000000e+00 : f32
    %12 = vector.broadcast %cst_8 : f32 to vector<32x512xf32>
    %13 = arith.addf %12, %11 : vector<32x512xf32>
    %14 = arith.mulf %8, %13 : vector<32x512xf32>
    %c0_9 = arith.constant 0 : index
    %c0_10 = arith.constant 0 : index
    %15 = vector.load %arg5[%c0_9, %c0_10] : memref<4x32xf32, #tpu.memory_space<vmem>>, vector<4x32xf32>
    %cst_11 = arith.constant dense<0.000000e+00> : vector<4x512xf32>
    %16 = tpu.matmul %15, %14, %cst_11 {dimension_numbers = #tpu.dot_dimension_numbers<[1], [0], [0], [1], [0, 0, 1, 1], [], []>} : vector<4x32xf32>, vector<32x512xf32>, vector<4x512xf32> -> vector<4x512xf32>
    %c0_12 = arith.constant 0 : index
    %c0_13 = arith.constant 0 : index
    %17 = vector.load %arg6[%c0_12, %c0_13] : memref<4x1xf32, #tpu.memory_space<vmem>>, vector<4x1xf32>
    %18 = vector.broadcast %17 : vector<4x1xf32> to vector<4x512xf32>
    %19 = arith.addf %16, %18 : vector<4x512xf32>
    %c0_14 = arith.constant 0 : index
    %c0_15 = arith.constant 0 : index
    %c0_16 = arith.constant 0 : index
    %20 = vector.load %arg7[%c0_14, %c0_15, %c0_16] : memref<1x4x512xf32, #tpu.memory_space<vmem>>, vector<1x4x512xf32>
    %21 = vector.shape_cast %20 : vector<1x4x512xf32> to vector<4x512xf32>
    %22 = vector.shape_cast %19 : vector<4x512xf32> to vector<1x4x512xf32>
    tpu.vector_store %arg7[%c0_14, %c0_15, %c0_16], %22 {strides = array<i32>} : memref<1x4x512xf32, #tpu.memory_space<vmem>>, vector<1x4x512xf32>,
    return
  }
  func.func @transform_0(%arg0: i32, %arg1: i32) -> (i32, i32, i32) {
    %c0_i32 = arith.constant 0 : i32
    %c0_i32_0 = arith.constant 0 : i32
    return %arg0, %c0_i32, %arg1 : i32, i32, i32
  }
  func.func @transform_1(%arg0: i32, %arg1: i32) -> (i32, i32) {
    %c0_i32 = arith.constant 0 : i32
    %c0_i32_0 = arith.constant 0 : i32
    %c0_i32_1 = arith.constant 0 : i32
    return %c0_i32, %c0_i32_0 : i32, i32
  }
  func.func @transform_2(%arg0: i32, %arg1: i32) -> (i32, i32) {
    %c0_i32 = arith.constant 0 : i32
    %c0_i32_0 = arith.constant 0 : i32
    %c0_i32_1 = arith.constant 0 : i32
    return %c0_i32, %c0_i32_0 : i32, i32
  }
  func.func @transform_3(%arg0: i32, %arg1: i32) -> (i32, i32) {
    %c0_i32 = arith.constant 0 : i32
    %c0_i32_0 = arith.constant 0 : i32
    %c0_i32_1 = arith.constant 0 : i32
    return %c0_i32, %c0_i32_0 : i32, i32
  }
  func.func @transform_4(%arg0: i32, %arg1: i32) -> (i32, i32) {
    %c0_i32 = arith.constant 0 : i32
    %c0_i32_0 = arith.constant 0 : i32
    %c0_i32_1 = arith.constant 0 : i32
    return %c0_i32, %c0_i32_0 : i32, i32
  }
  func.func @transform_5(%arg0: i32, %arg1: i32) -> (i32, i32, i32) {
    %c0_i32 = arith.constant 0 : i32
    %c0_i32_0 = arith.constant 0 : i32
    return %arg0, %c0_i32, %arg1 : i32, i32, i32
  }
}

</mosaic_0001>

<bundles_post_ra>
// kernel: mlp_forward.1
= control target key start
LH: loop header
LB: loop body
LE: loop exit
PB: predicated region body
PF: predicated region fallthrough
CT: control target
= control target key end

     0   :  { %s973_s18 = smov 0   ;;  %s975_s19 = smov 0   ;;  %s1075_s0 = inlined_call_operand.vmem [shape: f32[2,4,512], index: 0, kind: input, shape index: {}]   ;;  %s1076_s1 = inlined_call_operand.vmem [shape: f32[32,4], index: 1, kind: input, shape index: {}]   ;;  %s1077_s2 = inlined_call_operand.vmem [shape: f32[32,1], index: 2, kind: input, shape index: {}]   ;;  %s1078_s3 = inlined_call_operand.vmem [shape: f32[4,32], index: 3, kind: input, shape index: {}]   ;;  %s1079_s4 = inlined_call_operand.vmem [shape: f32[4,1], index: 4, kind: input, shape index: {}]   ;;  %s1080_s5 = inlined_call_operand.vmem [shape: f32[2,4,512], index: 5, kind: output, shape index: {}]  }
   0x1   :  { %s977_s20 = smov 0  }
   0x2 LB: > { %s27_s21 = sadd.s32 1, %s935_s19  ;;  %p832_p0 = scmp.ge.s32.totalorder %s939_s20, 1  ;;  %s939_s20 = sphi %s977_s20, %s15_s20   ;;  %s935_s19 = sphi %s975_s19, %s1082_s19   ;;  %s931_s18 = sphi %s973_s18, %s1081_s18  }
   0x3   : > { %p29_p1 = scmp.ge.s32.totalorder %s27_s21, 2  ;;  %p208_p2 = scmp.lt.s32.totalorder %s939_s20, 3 }
   0x5   : > { %s1084_s21 = smov (%p29_p1, %s27_s21), 0  ;;  %p209_p3 = pnand %p832_p0, %p208_p2 }
   0x6   : > { %p245_p4 = scmp.lt.s32.totalorder (!%p209_p3), %s931_s18, 1 }
   0x7   : > { %212 = sbr.rel (%p209_p3) target bundleno = 460 (0x1cc), region = 40 }
   0xc   : > { %v941_v0 = vmov 0.0   ;;  %v271_v1 = vld [vmem:[%s1077_s2 + $0x8] sm:$0xff]  ;;  %s1086_s18 = smov (!%p245_p4, %s931_s18), 1  ;;  %v942_v2 = vmov 0   ;;  %v273_v3 = vld [vmem:[%s1077_s2 + $0x18] sm:$0xff]  ;;  %v270_v4 = vld [vmem:[%s1077_s2] sm:$0xff] }
   0xd   : > { %384 = vmatprep.mubr.f32.mxu0 %v941_v0  ;;  %473 = vmatprep.mubr.f32.mxu1 %v941_v0  ;;  %s853_s26 = sshll.u32 %s1086_s18, 4  ;;  %v272_v5 = vld [vmem:[%s1077_s2 + $0x10] sm:$0xff]  ;;  %vm311_vm0 = vcmask 1043456   ;;  %v266_v10 = vld [vmem:[%s1076_s1] sm:$0xff]  ;;  %vm298_vm1 = vcmask 31744   ;;  %v267_v12 = vld [vmem:[%s1076_s1 + $0x8] sm:$0xff] }
   0xe   : > { %882 = vset.pattern.permute.xlu1 %v942_v2  ;;  %881 = vset.pattern.permute.xlu0 %v942_v2  ;;  %s252_s8 = scalar_lea.vmem %s1075_s0, %s853_s26  ;;  %v579_v11 = vld [vmem:[%s1079_s4] sm:$0xf]  ;;  %v268_v13 = vld [vmem:[%s1076_s1 + $0x10] sm:$0xff]  ;;  %v269_v14 = vld [vmem:[%s1076_s1 + $0x18] sm:$0xff]  ;;  %vm585_vm2 = vcmask 261120   ;;  %s262_s28 = scalar_lea.vmem %s1080_s5, %s853_s26 }
   0xf   : > { %281 = vperm.xlu1 %882, %v271_v1   ;;  %291 = vperm.xlu0 %881, %v273_v3   ;;  %v264_v6 = vld [vmem:[%s252_s8] sm:$0xff]  ;;  %v265_v7 = vld [vmem:[%s252_s8 + $0x8] sm:$0xff] }
  0x10   : > { %v296_v8 = vcombine.high %v264_v6, %v264_v6  ;;  %v297_v9 = vcombine.high %v265_v7, %v265_v7 }
  0x12   : > { %837 = vmatprep.subr.msk.mxu0 %vm311_vm0, %v296_v8  ;;  %843 = vmatprep.subr.msk.mxu1 %vm311_vm0, %v297_v9 }
  0x13   : > { %276 = vperm.xlu1 %882, %v270_v4   ;;  %286 = vperm.xlu0 %881, %v272_v5  }
  0x14   : > { %838 = vmatpush1.msk.msra.mxu0 %vm311_vm0, %v264_v6  ;;  %844 = vmatpush1.msk.msra.mxu1 %vm311_vm0, %v265_v7 }
  0x15   : > { %839 = vmatmul.mubr.msk.f32.vlgmr.msra.gmra.mxu0 %vm298_vm1, %v266_v10  ;;  %845 = vmatmul.mubr.msk.f32.vlgmr.msra.gmra.mxu1 %vm298_vm1, %v266_v10 }
  0x16   : > { %390 = vmatprep.mubr.f32.mxu0 %v941_v0  ;;  %479 = vmatprep.mubr.f32.mxu1 %v941_v0 }
  0x17   : > { %582 = vperm.xlu0 %881, %v579_v11  }
  0x19   : > { %840 = vmatmul.mubr.msk.f32.gmra.mxu0 %vm298_vm1, %v267_v12  ;;  %846 = vmatmul.mubr.msk.f32.gmra.mxu1 %vm298_vm1, %v267_v12 }
  0x1a   : > { %396 = vmatprep.mubr.f32.mxu0 %v941_v0  ;;  %485 = vmatprep.mubr.f32.mxu1 %v941_v0 }
  0x1d   : > { %841 = vmatmul.mubr.msk.f32.gmra.mxu0 %vm298_vm1, %v268_v13  ;;  %847 = vmatmul.mubr.msk.f32.gmra.mxu1 %vm298_vm1, %v268_v13 }
  0x1e   : > { %402 = vmatprep.mubr.f32.mxu0 %v941_v0  ;;  %491 = vmatprep.mubr.f32.mxu1 %v941_v0 }
  0x21   : > { %842 = vmatmul.mubr.msk.f32.gmra.mxu0 %vm298_vm1, %v269_v14  ;;  %848 = vmatmul.mubr.msk.f32.gmra.mxu1 %vm298_vm1, %v269_v14 }
  0x22   : > { %653 = vmatprep.mubr.f32.mxu0 %v941_v0  ;;  %724 = vmatprep.mubr.f32.mxu1 %v941_v0 }
  0x8a   : > { %v282_v15 = vpop.permute.xlu1 %281  ;;  %v292_v17 = vpop.permute.xlu0 %291 }
  0x8e   : > { %v277_v16 = vpop.permute.xlu1 %276  ;;  %v287_v27 = vpop.permute.xlu0 %286 }
  0xd5   : > { %v386_v18 = vpop.f32.mrf.mxu0  ;;  %v475_v19 = vpop.f32.mrf.mxu1 }
  0xd6   : > { %v1034_v20 = vadd.f32 %v386_v18, %v277_v16  ;;  %v1047_v59 = vadd.f32 %v475_v19, %v277_v16 }
  0xd7   : > { %v388_v21 = vpop.f32.mrf.mxu0  ;;  %v477_v22 = vpop.f32.mrf.mxu1 }
  0xd8   : > { %v1036_v23 = vadd.f32 %v388_v21, %v277_v16  ;;  %v514_v28 = vmul.f32 0.70710677, %v1034_v20  ;;  %v1043_v54 = vadd.f32 %v477_v22, %v277_v16  ;;  %v516_v2 = vmul.f32 0.70710677, %v1047_v59 }
  0xd9   : > { %v392_v24 = vpop.f32.mrf.mxu0  ;;  %v481_v25 = vpop.f32.mrf.mxu1 }
  0xda   : > { %v1038_v26 = vadd.f32 %v392_v24, %v282_v15  ;;  %v515_v31 = vmul.f32 0.70710677, %v1036_v23  ;;  %885 = verf.f32 %v514_v28  ;;  %v1045_v55 = vadd.f32 %v481_v25, %v282_v15 }
  0xdb   : > { %v394_v29 = vpop.f32.mrf.mxu0  ;;  %v483_v30 = vpop.f32.mrf.mxu1  ;;  %v517_v0 = vmul.f32 0.70710677, %v1043_v54  ;;  %v499_v13 = vmul.f32 0.5, %v1036_v23 }
  0xdc   : > { %v518_v32 = vmul.f32 0.70710677, %v1038_v26  ;;  %v395_v33 = vadd.f32 %v394_v29, %v282_v15  ;;  %v484_v34 = vadd.f32 %v483_v30, %v282_v15  ;;  %887 = verf.f32 %v515_v31 }
  0xdd   : > { %v398_v35 = vpop.f32.mrf.mxu0  ;;  %v487_v36 = vpop.f32.mrf.mxu1  ;;  %v520_v62 = vmul.f32 0.70710677, %v1045_v55  ;;  %v502_v14 = vmul.f32 0.5, %v1038_v26 }
  0xde   : > { %v399_v37 = vadd.f32 %v398_v35, %v287_v27  ;;  %v488_v38 = vadd.f32 %v487_v36, %v287_v27  ;;  %v519_v39 = vmul.f32 0.70710677, %v395_v33  ;;  %v521_v42 = vmul.f32 0.70710677, %v484_v34 }
  0xdf   : > { %v400_v40 = vpop.f32.mrf.mxu0  ;;  %v489_v41 = vpop.f32.mrf.mxu1  ;;  %889 = verf.f32 %v518_v32  ;;  %v503_v16 = vmul.f32 0.5, %v395_v33 }
  0xe0   : > { %v522_v43 = vmul.f32 0.70710677, %v399_v37  ;;  %v524_v44 = vmul.f32 0.70710677, %v488_v38  ;;  %v401_v45 = vadd.f32 %v400_v40, %v287_v27  ;;  %891 = verf.f32 %v519_v39 }
  0xe1   : > { %v404_v46 = vpop.f32.mrf.mxu0  ;;  %v493_v47 = vpop.f32.mrf.mxu1  ;;  %v490_v48 = vadd.f32 %v489_v41, %v287_v27  ;;  %893 = verf.f32 %v521_v42  ;;  %v506_v18 = vmul.f32 0.5, %v399_v37  ;;  %v508_v19 = vmul.f32 0.5, %v488_v38 }
  0xe2   : > { %v405_v49 = vadd.f32 %v404_v46, %v292_v17  ;;  %v494_v50 = vadd.f32 %v493_v47, %v292_v17  ;;  %v523_v51 = vmul.f32 0.70710677, %v401_v45  ;;  %895 = verf.f32 %v522_v43 }
  0xe3   : > { %v406_v52 = vpop.f32.mrf.mxu0  ;;  %v495_v53 = vpop.f32.mrf.mxu1  ;;  %897 = verf.f32 %v524_v44  ;;  %v525_v56 = vmul.f32 0.70710677, %v490_v48  ;;  %v507_v22 = vmul.f32 0.5, %v401_v45  ;;  %v509_v24 = vmul.f32 0.5, %v490_v48 }
  0xe4   : > { %v526_v57 = vmul.f32 0.70710677, %v405_v49  ;;  %v528_v58 = vmul.f32 0.70710677, %v494_v50  ;;  %899 = verf.f32 %v523_v51  ;;  %v407_v60 = vadd.f32 %v406_v52, %v292_v17 }
  0xe5   : > { %v496_v61 = vadd.f32 %v495_v53, %v292_v17  ;;  %v505_v17 = vmul.f32 0.5, %v484_v34  ;;  %v510_v25 = vmul.f32 0.5, %v405_v49  ;;  %v512_v34 = vmul.f32 0.5, %v494_v50 }
  0xe6   : > { %901 = verf.f32 %v526_v57  ;;  %v527_v63 = vmul.f32 0.70710677, %v407_v60  ;;  %v511_v30 = vmul.f32 0.5, %v407_v60  ;;  %v504_v50 = vmul.f32 0.5, %v1045_v55 }
  0xe7   : > { %903 = verf.f32 %v528_v58  ;;  %v529_v1 = vmul.f32 0.70710677, %v496_v61  ;;  %v886_v3 = vpop.eup %885  ;;  %v513_v23 = vmul.f32 0.5, %v496_v61  ;;  %v498_v61 = vmul.f32 0.5, %v1034_v20  ;;  %v578_v20 = vld [vmem:[%s1078_s3] sm:$0xf] }
  0xe8   : > { %905 = verf.f32 %v525_v56  ;;  %v546_v51 = vadd.f32 1.0, %v886_v3 }
  0xe9   : > { %907 = verf.f32 %v527_v63  ;;  %v888_v4 = vpop.eup %887 }
  0xea   : > { %909 = verf.f32 %v529_v1  ;;  %v547_v49 = vadd.f32 1.0, %v888_v4  ;;  %v500_v1 = vmul.f32 0.5, %v1047_v59  ;;  %v562_v4 = vmul.f32 %v546_v51, %v498_v61 }
  0xeb   : > { %911 = verf.f32 %v520_v62  ;;  %v501_v62 = vmul.f32 0.5, %v1043_v54 }
  0xec   : > { %913 = verf.f32 %v517_v0  ;;  %v890_v5 = vpop.eup %889  ;;  %v563_v3 = vmul.f32 %v547_v49, %v499_v13 }
  0xed   : > { %915 = verf.f32 %v516_v2  ;;  %v892_v6 = vpop.eup %891  ;;  %v550_v42 = vadd.f32 1.0, %v890_v5 }
  0xee   : > { %v894_v7 = vpop.eup %893  ;;  %v551_v38 = vadd.f32 1.0, %v892_v6  ;;  %v583_v6 = vpop.permute.xlu0 %582 }
  0xef   : > { %v896_v8 = vpop.eup %895  ;;  %v553_v45 = vadd.f32 1.0, %v894_v7  ;;  %v566_v63 = vmul.f32 %v550_v42, %v502_v14 }
  0xf0   : > { %v898_v9 = vpop.eup %897  ;;  %v554_v36 = vadd.f32 1.0, %v896_v8  ;;  %v567_v60 = vmul.f32 %v551_v38, %v503_v16 }
  0xf1   : > { %v900_v10 = vpop.eup %899  ;;  %v556_v33 = vadd.f32 1.0, %v898_v9  ;;  %v569_v0 = vmul.f32 %v553_v45, %v505_v17 }
  0xf2   : > { %v555_v32 = vadd.f32 1.0, %v900_v10  ;;  %v570_v52 = vmul.f32 %v554_v36, %v506_v18 }
  0xf3   : > { %v902_v11 = vpop.eup %901  ;;  %v572_v58 = vmul.f32 %v556_v33, %v508_v19 }
  0xf4   : > { %v904_v12 = vpop.eup %903  ;;  %v558_v27 = vadd.f32 1.0, %v902_v11  ;;  %v571_v48 = vmul.f32 %v555_v32, %v507_v22 }
  0xf5   : > { %v906_v15 = vpop.eup %905  ;;  %v560_v29 = vadd.f32 1.0, %v904_v12 }
  0xf6   : > { %v908_v21 = vpop.eup %907  ;;  %v557_v26 = vadd.f32 1.0, %v906_v15  ;;  %v574_v43 = vmul.f32 %v558_v27, %v510_v25 }
  0xf7   : > { %v910_v28 = vpop.eup %909  ;;  %v559_v31 = vadd.f32 1.0, %v908_v21  ;;  %v576_v47 = vmul.f32 %v560_v29, %v512_v34 }
  0xf8   : > { %v912_v35 = vpop.eup %911  ;;  %v561_v39 = vadd.f32 1.0, %v910_v28  ;;  %v573_v53 = vmul.f32 %v557_v26, %v509_v24 }
  0xf9   : > { %v914_v40 = vpop.eup %913  ;;  %v575_v37 = vmul.f32 %v559_v31, %v511_v30  ;;  %v552_v46 = vadd.f32 1.0, %v912_v35 }
  0xfa   : > { %v916_v41 = vpop.eup %915  ;;  %v577_v44 = vmul.f32 %v561_v39, %v513_v23  ;;  %v549_v56 = vadd.f32 1.0, %v914_v40 }
  0xfb   : > { %613 = vmatprep.subr.mxu0 %v575_v37  ;;  %v548_v57 = vadd.f32 1.0, %v916_v41  ;;  %v568_v2 = vmul.f32 %v552_v46, %v504_v50 }
  0xfc   : > { %684 = vmatprep.subr.mxu1 %v577_v44  ;;  %614 = vmatpush1.msra.mxu0 %v574_v43  ;;  %v565_v55 = vmul.f32 %v549_v56, %v501_v62 }
  0xfd   : > { %685 = vmatpush1.msra.mxu1 %v576_v47  ;;  %615 = vmatprep.subr.mxu0 %v571_v48  ;;  %v564_v54 = vmul.f32 %v548_v57, %v500_v1 }
  0xfe   : > { %686 = vmatprep.subr.mxu1 %v573_v53  ;;  %616 = vmatpush1.msra.mxu0 %v570_v52 }
  0xff   : > { %687 = vmatpush1.msra.mxu1 %v572_v58  ;;  %617 = vmatprep.subr.mxu0 %v567_v60 }
 0x100   : > { %688 = vmatprep.subr.mxu1 %v569_v0  ;;  %618 = vmatpush1.msra.mxu0 %v566_v63 }
 0x101   : > { %689 = vmatpush1.msra.mxu1 %v568_v2  ;;  %619 = vmatprep.subr.mxu0 %v563_v3 }
 0x102   : > { %690 = vmatprep.subr.mxu1 %v565_v55  ;;  %620 = vmatpush1.msra.mxu0 %v562_v4 }
 0x103   : > { %691 = vmatpush1.msra.mxu1 %v564_v54  ;;  %849 = vmatmul.mubr.msk.f32.vlgmr.msra.gmra.mxu0 %vm585_vm2, %v578_v20 }
 0x104   : > { %850 = vmatmul.mubr.msk.f32.vlgmr.msra.gmra.mxu1 %vm585_vm2, %v578_v20 }
 0x1c3   : > { %v655_v59 = vpop.f32.mrf.mxu0 }
 0x1c4   : > { %v726_v5 = vpop.f32.mrf.mxu1  ;;  %v656_v8 = vadd.f32 %v655_v59, %v583_v6 }
 0x1c5   : > { %v657_v7 = vpop.f32.mrf.mxu0  ;;  %v727_v11 = vadd.f32 %v726_v5, %v583_v6 }
 0x1c6   : > { %v658_v9 = vadd.f32 %v657_v7, %v583_v6  ;;  %v728_v10 = vpop.f32.mrf.mxu1 }
 0x1c7   : > { %v729_v12 = vadd.f32 %v728_v10, %v583_v6 }
 0x1c8   : > { %v735_v13 = vcombine.low %v656_v8, %v658_v9 }
 0x1c9   : > { %v736_v14 = vcombine.low %v727_v11, %v729_v12 }
 0x1ca   : > { %739 = vst [vmem:[%s262_s28] sm:$0xff] %v735_v13 }
 0x1cb   : > { %740 = vst [vmem:[%s262_s28 + $0x8] sm:$0xff] %v736_v14 }
 0x1cc PF: > { %s15_s20 = sadd.s32 1, %s939_s20   ;;  %s1081_s18 = smov %s935_s19 }
 0x1cd   : > { %p12_p5 = scmp.ge.s32.totalorder %s15_s20, 4   ;;  %s1082_s19 = smov %s1084_s21 }
 0x1cf   :  { %14 = sbr.rel (!%p12_p5) target bundleno = 2 (0x2), region = 70 }

</bundles_post_ra>
